<compile_context>
chip_gen: v5e
topology: v5e:2x2
jax: 0.10.0
libtpu: 0.0.40
codegen_flags: <defaults>
</compile_context>

<pallas_src>
import jax
import jax.numpy as jnp
from jax.experimental import pallas as pl
from jax.experimental.pallas import tpu as pltpu

EPS = 1e-5  # nn.LayerNorm default


def _round_up(x, m):
    return (x + m - 1) // m * m


def _chip_traits():
    """Returns (vmem_capacity_bytes, has_two_tensorcores) with safe fallbacks."""
    vmem_cap = 64 << 20  # conservative default (v7x-sized) if query fails
    try:
        info = pltpu.get_tpu_info()
        vmem_cap = int(getattr(info, "vmem_capacity_bytes", vmem_cap))
    except Exception:
        pass
    # Heuristic: the 64-MiB-per-TC generation (v7x) is the 2-TensorCore one;
    # v5e/v6e (128 MiB VMEM) run the whole grid on a single TC.
    two_tc = vmem_cap <= (64 << 20)
    return vmem_cap, two_tc


def _tile_footprints(d, itemsize):
    """Per-row and fixed VMEM bytes for one grid step (pipeline + temps)."""
    d_pad = _round_up(d, 128)                        # lane padding
    per_row_pipe = 2 * d_pad * itemsize + 128 * 4    # x tile + out tile + (tm,1) i32 mask
    per_row_temp = 2 * d_pad * 4                     # f32 upcast / fused-epilogue temps
    per_row = 2 * per_row_pipe + per_row_temp        # pipeline buffers are double-buffered
    fixed = 2 * 2 * 8 * d_pad * 4                    # gamma/beta (sublane-padded, dbuf)
    return per_row, fixed


def _pick_tile(n, d, itemsize, tm_req, budget, two_tc):
    """Largest sublane-multiple tile fitting the VMEM budget; >=2 steps on 2-TC chips."""
    sub = 16 if itemsize == 2 else 8                 # bf16 packs 2 rows per sublane
    per_row, fixed = _tile_footprints(d, itemsize)
    tm_budget = max(sub, ((budget - fixed) // per_row) // sub * sub)
    tm_eff = min(_round_up(max(tm_req, 1), sub), _round_up(n, sub), tm_budget)
    if two_tc:
        # Give the "parallel" grid axis at least 2 steps so both TensorCores
        # get work when N is small; no effect once N >= 2 * tm_eff.
        tm_eff = min(tm_eff, max(sub, _round_up(pl.cdiv(n, 2), sub)))
    tm_eff = max(sub, tm_eff)
    vmem_bytes = tm_eff * per_row + fixed
    return tm_eff, vmem_bytes


def _ln_mask_kernel(x_ref, m_ref, g_ref, b_ref, o_ref):
    # x_ref: (tm, D); m_ref: (tm, 1) i32; g_ref/b_ref: (1, D); o_ref: (tm, D)
    # One-pass statistics: only (tm, 1) values stay live across the reductions.
    inv_d = 1.0 / x_ref.shape[-1]
    xf = x_ref[...].astype(jnp.float32)
    mean = jnp.sum(xf, axis=-1, keepdims=True) * inv_d
    ex2 = jnp.sum(xf * xf, axis=-1, keepdims=True) * inv_d
    var = jnp.maximum(ex2 - mean * mean, 0.0)        # biased variance, like PyTorch LN
    inv = jax.lax.rsqrt(var + EPS)
    # Fused epilogue: re-read x, normalize, affine, mask, cast, single store.
    y = ((x_ref[...].astype(jnp.float32) - mean) * inv
         * g_ref[...].astype(jnp.float32) + b_ref[...].astype(jnp.float32))
    # Select (not multiply) so NaN/Inf in invalid/OOB rows becomes exact 0,
    # matching the PyTorch gather/LN/scatter semantics.
    o_ref[...] = jnp.where(m_ref[...] != 0, y, 0.0).astype(o_ref.dtype)


def _masked_layernorm_2d(x, mask, gamma, beta, *, tm=512):
    """x: (N, D); mask: (N,) bool; gamma/beta: (D,). Returns (N, D)."""
    N, D = x.shape
    itemsize = jnp.dtype(x.dtype).itemsize

    vmem_cap, two_tc = _chip_traits()
    small_vmem = vmem_cap <= (64 << 20)
    budget = (44 << 20) if small_vmem else (96 << 20)     # pipeline + temps budget
    limit_cap = (56 << 20) if small_vmem else (112 << 20)  # never ask for all of VMEM

    tm_eff, tile_bytes = _pick_tile(N, D, itemsize, tm, budget, two_tc)
    vmem_limit = int(min(limit_cap, max(32 << 20, tile_bytes + (4 << 20))))

    m2 = mask.reshape(N, 1).astype(jnp.int32)   # tiny next to x traffic; no tm-dep pad
    g = gamma.reshape(1, D)
    b = beta.reshape(1, D)

    cost = pl.CostEstimate(
        flops=6 * N * D,                        # sum, sum-sq, sub, 2x mul, add per elem
        transcendentals=N,                      # one rsqrt per token
        bytes_accessed=2 * N * D * itemsize + N * 4 + 2 * D * 4)

    # TODO(synk): for production D < 128 the output last dim is lane-sparse
    # (masked vst); a token-fusing reshape would fix that but production D is
    # assumed >= 128 here.
    return pl.pallas_call(
        _ln_mask_kernel,
        out_shape=jax.ShapeDtypeStruct((N, D), x.dtype),
        grid_spec=pltpu.PrefetchScalarGridSpec(
            num_scalar_prefetch=0,
            grid=(pl.cdiv(N, tm_eff),),          # ragged last block: OOB rows dropped
            in_specs=[
                pl.BlockSpec((tm_eff, D), lambda i: (i, 0)),   # x tile
                pl.BlockSpec((tm_eff, 1), lambda i: (i, 0)),   # mask tile (i32)
                pl.BlockSpec((1, D), lambda i: (0, 0)),        # gamma
                pl.BlockSpec((1, D), lambda i: (0, 0)),        # beta
            ],
            out_specs=pl.BlockSpec((tm_eff, D), lambda i: (i, 0)),
        ),
        compiler_params=pltpu.CompilerParams(
            dimension_semantics=("parallel",),
            vmem_limit_bytes=vmem_limit),
        cost_estimate=cost,
    )(x, m2, g, b)


def mot_layernorm(hidden_states, valid_pos, gammas, betas, *, tm=512):
    """hidden_states: list[T] of (B, S, D); valid_pos: list[T] of (B, S) bool;
    gammas/betas: list[T] of (D,). Returns list[T] of (B, S, D)."""
    outs = []
    for h, v, g, b in zip(hidden_states, valid_pos, gammas, betas):
        B, S, D = h.shape
        N = B * S
        o = _masked_layernorm_2d(h.reshape(N, D), v.reshape(N), g, b, tm=tm)
        outs.append(o.reshape(B, S, D))
    return outs


def ref_mot_layernorm(hidden_states, valid_pos, gammas, betas):
    outs = []
    for t, h in enumerate(hidden_states):
        mean = jnp.mean(h, axis=-1, keepdims=True)
        var = jnp.mean((h - mean) ** 2, axis=-1, keepdims=True)
        y = (h - mean) / jnp.sqrt(var + EPS) * gammas[t] + betas[t]
        outs.append(jnp.where(valid_pos[t][..., None], y, jnp.zeros_like(y)))
    return outs


if __name__ == "__main__":
    key = jax.random.PRNGKey(0)

    def run_case(B, S, D, T, tm):
        k = jax.random.fold_in(key, B * 100000 + S * 100 + D)
        k_h, k_t, k_g, k_b = jax.random.split(k, 4)

        hk = jax.random.split(k_h, T)
        hidden_states = [jax.random.normal(hk[t], (B, S, D), jnp.float32)
                         for t in range(T)]

        type_ids = jax.random.randint(k_t, (B, S), 0, T)
        valid_pos = [type_ids == t for t in range(T)]

        gk = jax.random.split(k_g, T)
        bk = jax.random.split(k_b, T)
        gammas = [1.0 + 0.1 * jax.random.normal(gk[t], (D,), jnp.float32)
                  for t in range(T)]
        betas = [0.1 * jax.random.normal(bk[t], (D,), jnp.float32)
                 for t in range(T)]

        outs = mot_layernorm(hidden_states, valid_pos, gammas, betas, tm=tm)
        outs = [jax.block_until_ready(o) for o in outs]

        refs = ref_mot_layernorm(hidden_states, valid_pos, gammas, betas)
        for o, r in zip(outs, refs):
            assert o.shape == r.shape and o.dtype == r.dtype
            assert jnp.allclose(o, r, atol=5e-5, rtol=5e-5), "mismatch vs reference"

    # Small demo shape (one or two token tiles per modality).
    run_case(B=2, S=8, D=32, T=2, tm=512)
    # Exercises multi-step grid + ragged last block (N=18 not a multiple of 8).
    run_case(B=2, S=9, D=32, T=2, tm=8)
    # Lane-dense D with a ragged tail and 3 modalities.
    run_case(B=2, S=50, D=128, T=3, tm=64)

    print("KERNEL_OK")
</pallas_src>

<mosaic_0001>
module attributes {stable_mosaic.version = 11 : i64} {
  func.func @_ln_mask_kernel(%arg0: i32, %arg1: memref<8x32xf32, #tpu.memory_space<vmem>>, %arg2: memref<8x1xi32, #tpu.memory_space<vmem>>, %arg3: memref<1x32xf32, #tpu.memory_space<vmem>>, %arg4: memref<1x32xf32, #tpu.memory_space<vmem>>, %arg5: memref<8x32xf32, #tpu.memory_space<vmem>>) attributes {dimension_semantics = [#tpu.dimension_semantics<parallel>], iteration_bounds = array<i64: 2>, scalar_prefetch = 0 : i64, scratch_operands = 0 : i64, tpu.core_type = #tpu.core_type<tc>, window_params = [{transform_indices = @transform_0, window_bounds = array<i64: 8, 32>}, {transform_indices = @transform_1, window_bounds = array<i64: 8, 1>}, {pipeline_mode = #tpu.pipeline_mode<synchronous>, transform_indices = @transform_2, window_bounds = array<i64: 1, 32>}, {pipeline_mode = #tpu.pipeline_mode<synchronous>, transform_indices = @transform_3, window_bounds = array<i64: 1, 32>}, {transform_indices = @transform_4, window_bounds = array<i64: 8, 32>}]} {
    %c0 = arith.constant 0 : index
    %c0_0 = arith.constant 0 : index
    %0 = vector.load %arg1[%c0, %c0_0] : memref<8x32xf32, #tpu.memory_space<vmem>>, vector<8x32xf32>
    %cst = arith.constant dense<0.000000e+00> : vector<8xf32>
    %1 = vector.multi_reduction <add>, %0, %cst [1] : vector<8x32xf32> to vector<8xf32>
    %2 = vector.shape_cast %1 : vector<8xf32> to vector<8x1xf32>
    %cst_1 = arith.constant 3.125000e-02 : f32
    %3 = vector.broadcast %cst_1 : f32 to vector<8x1xf32>
    %4 = arith.mulf %2, %3 : vector<8x1xf32>
    %5 = arith.mulf %0, %0 : vector<8x32xf32>
    %cst_2 = arith.constant dense<0.000000e+00> : vector<8xf32>
    %6 = vector.multi_reduction <add>, %5, %cst_2 [1] : vector<8x32xf32> to vector<8xf32>
    %7 = vector.shape_cast %6 : vector<8xf32> to vector<8x1xf32>
    %cst_3 = arith.constant 3.125000e-02 : f32
    %8 = vector.broadcast %cst_3 : f32 to vector<8x1xf32>
    %9 = arith.mulf %7, %8 : vector<8x1xf32>
    %10 = arith.mulf %4, %4 : vector<8x1xf32>
    %11 = arith.subf %9, %10 : vector<8x1xf32>
    %cst_4 = arith.constant 0.000000e+00 : f32
    %12 = vector.broadcast %cst_4 : f32 to vector<8x1xf32>
    %13 = arith.maximumf %11, %12 : vector<8x1xf32>
    %cst_5 = arith.constant 9.99999974E-6 : f32
    %14 = vector.broadcast %cst_5 : f32 to vector<8x1xf32>
    %15 = arith.addf %13, %14 : vector<8x1xf32>
    %16 = math.rsqrt %15 : vector<8x1xf32>
    %c0_6 = arith.constant 0 : index
    %c0_7 = arith.constant 0 : index
    %17 = vector.load %arg1[%c0_6, %c0_7] : memref<8x32xf32, #tpu.memory_space<vmem>>, vector<8x32xf32>
    %18 = vector.broadcast %4 : vector<8x1xf32> to vector<8x32xf32>
    %19 = arith.subf %17, %18 : vector<8x32xf32>
    %20 = vector.broadcast %16 : vector<8x1xf32> to vector<8x32xf32>
    %21 = arith.mulf %19, %20 : vector<8x32xf32>
    %c0_8 = arith.constant 0 : index
    %c0_9 = arith.constant 0 : index
    %22 = vector.load %arg3[%c0_8, %c0_9] : memref<1x32xf32, #tpu.memory_space<vmem>>, vector<1x32xf32>
    %23 = vector.broadcast %22 : vector<1x32xf32> to vector<8x32xf32>
    %24 = arith.mulf %21, %23 : vector<8x32xf32>
    %c0_10 = arith.constant 0 : index
    %c0_11 = arith.constant 0 : index
    %25 = vector.load %arg4[%c0_10, %c0_11] : memref<1x32xf32, #tpu.memory_space<vmem>>, vector<1x32xf32>
    %26 = vector.broadcast %25 : vector<1x32xf32> to vector<8x32xf32>
    %27 = arith.addf %24, %26 : vector<8x32xf32>
    %c0_12 = arith.constant 0 : index
    %c0_13 = arith.constant 0 : index
    %28 = vector.load %arg2[%c0_12, %c0_13] : memref<8x1xi32, #tpu.memory_space<vmem>>, vector<8x1xi32>
    %c0_i32 = arith.constant 0 : i32
    %29 = vector.broadcast %c0_i32 : i32 to vector<8x1xi32>
    %30 = arith.cmpi ne, %28, %29 : vector<8x1xi32>
    %cst_14 = arith.constant 0.000000e+00 : f32
    %31 = vector.shape_cast %30 : vector<8x1xi1> to vector<8x1xi1>
    %32 = vector.broadcast %31 : vector<8x1xi1> to vector<8x32xi1>
    %33 = vector.broadcast %cst_14 : f32 to vector<8x32xf32>
    %34 = arith.select %32, %27, %33 : vector<8x32xi1>, vector<8x32xf32>
    %c0_15 = arith.constant 0 : index
    %c0_16 = arith.constant 0 : index
    %35 = vector.load %arg5[%c0_15, %c0_16] : memref<8x32xf32, #tpu.memory_space<vmem>>, vector<8x32xf32>
    tpu.vector_store %arg5[%c0_15, %c0_16], %34 {strides = array<i32>} : memref<8x32xf32, #tpu.memory_space<vmem>>, vector<8x32xf32>,
    return
  }
  func.func @transform_0(%arg0: i32) -> (i32, i32) {
    %c0_i32 = arith.constant 0 : i32
    %c0_i32_0 = arith.constant 0 : i32
    return %arg0, %c0_i32 : i32, i32
  }
  func.func @transform_1(%arg0: i32) -> (i32, i32) {
    %c0_i32 = arith.constant 0 : i32
    %c0_i32_0 = arith.constant 0 : i32
    return %arg0, %c0_i32 : i32, i32
  }
  func.func @transform_2(%arg0: i32) -> (i32, i32) {
    %c0_i32 = arith.constant 0 : i32
    %c0_i32_0 = arith.constant 0 : i32
    %c0_i32_1 = arith.constant 0 : i32
    return %c0_i32, %c0_i32_0 : i32, i32
  }
  func.func @transform_3(%arg0: i32) -> (i32, i32) {
    %c0_i32 = arith.constant 0 : i32
    %c0_i32_0 = arith.constant 0 : i32
    %c0_i32_1 = arith.constant 0 : i32
    return %c0_i32, %c0_i32_0 : i32, i32
  }
  func.func @transform_4(%arg0: i32) -> (i32, i32) {
    %c0_i32 = arith.constant 0 : i32
    %c0_i32_0 = arith.constant 0 : i32
    return %arg0, %c0_i32 : i32, i32
  }
}

</mosaic_0001>

<bundles_post_ra>
// kernel: tpu_custom_call.1
= control target key start
LH: loop header
LB: loop body
LE: loop exit
PB: predicated region body
PF: predicated region fallthrough
CT: control target
= control target key end

     0   :  { %9 = vsyncpa [#allocation3], 0  ;;  %s587_s0 = inlined_call_operand.vmem [shape: f32[16,32], index: 0, kind: input, shape index: {}]   ;;  %s588_s1 = inlined_call_operand.vmem [shape: s32[16,1], index: 1, kind: input, shape index: {}]   ;;  %s589_s2 = inlined_call_operand.vmem [shape: f32[1,32], index: 2, kind: input, shape index: {}]   ;;  %s590_s3 = inlined_call_operand.vmem [shape: f32[1,32], index: 3, kind: input, shape index: {}]   ;;  %s591_s4 = inlined_call_operand.hbm [shape: f32[16,32], index: 4, kind: output, shape index: {}]  }
   0x1   :  { %11 = vsyncpa [#allocation3 + $0x1], 0  ;;  %s490_s15 = smov 0   ;;  %s492_s16 = smov 0  }
   0x2   :  { %s494_s17 = smov 0   ;;  %s496_s18 = smov 0  }
   0x3 LB: > { %s511_s19 = sadd.s32 4294967295, %s462_s18   ;;  %s343_s20 = sadd.s32 4294967294, %s462_s18   ;;  %s462_s18 = sphi %s496_s18, %s597_s18   ;;  %s458_s17 = sphi %s494_s17, %s596_s17   ;;  %s454_s16 = sphi %s492_s16, %s595_s16   ;;  %s450_s15 = sphi %s490_s15, %s594_s15  }
   0x4   : > { %s515_s21 = sadd.s32 1, %s462_s18   ;;  %s118_s22 = sadd.s32 1, %s458_s17 }
   0x5   : > { %s115_s23 = ssub.s32 %s462_s18, %s515_s21  ;;  %p128_p0 = scmp.ne.s32.totalorder %s458_s17, %s454_s16 }
   0x6   : > { %p116_p1 = scmp.eq.s32.totalorder %s115_s23, 0  ;;  %p129_p2 = scmp.eq.s32.totalorder %s511_s19, 1 }
   0x7   : > { %p134_p3 = scmp.ne.s32.totalorder %s454_s16, %s450_s15  ;;  %p135_p4 = scmp.eq.s32.totalorder %s343_s20, 1 }
   0x8   : > { %s526_s24 = scalar_select %p116_p1, %s458_s17, %s118_s22  }
   0x9   : > { %p528_p5 = por %p129_p2, %p128_p0  ;;  %p532_p6 = por %p135_p4, %p134_p3 }
   0xa   : > { %p346_p7 = scmp.ge.s32.totalorder %s462_s18, 1  ;;  %p173_p8 = scmp.lt.s32.totalorder %s462_s18, 3 }
   0xc   : > { %p174_p9 = pnand %p346_p7, %p173_p8 }
   0xd   : > { %p202_p10 = scmp.lt.s32.totalorder (!%p174_p9), %s511_s19, 1  ;;  %s199_s9 = sand.u32 (!%p174_p9), 1, %s454_s16  }
   0xe   : > { %177 = sbr.rel (%p174_p9) target bundleno = 185 (0xb9), region = 36  ;;  %s347_s10 = sshll.u32 (!%p174_p9), %s199_s9, 3 }
   0xf   : > { %s351_s11 = sshll.u32 (!%p174_p9), %s511_s19, 3  ;;  %s257_s30 = scalar_lea.sflag (!%p174_p9), [#allocation3], %s199_s9 }
  0x10   : > { %s267_s22 = scalar_lea.hbm (!%p174_p9), %s591_s4, %s351_s11 }
  0x11   : > { %s271_s29 = sshll.u32 (!%p174_p9), %s267_s22, 4  ;;  %s272_s29 = int_to_ptr.hbm [resolvable:$true] %s271_s29 }
  0x13   : > { %v464_v0 = vmov 0   ;;  %s203_s27 = scalar_select %p202_p10, %s511_s19, 1  ;;  %vm211_vm0 = vcmask 261120   ;;  %v396_v22 = vld [vmem:[%s589_s2] ss:$0 sm:$0xff] }
  0x14   : > { %394 = vset.pattern.permute.xlu1 %v464_v0  ;;  %395 = vset.pattern.permute.xlu0 %v464_v0  ;;  %v397_v24 = vld [vmem:[%s590_s3] ss:$0 sm:$0xff]  ;;  %s201_s19 = scalar_lea.vmem [#allocation2], %s347_s10  ;;  %s420_s10 = scalar_lea.hbm %s591_s4, 16 }
  0x15   : > { %s348_s28 = sshll.u32 %s203_s27, 3 }
  0x16   : > { %s205_s5 = scalar_lea.vmem %s587_s0, %s348_s28  ;;  %s209_s8 = scalar_lea.vmem %s588_s1, %s348_s28 }
  0x17   : > { %v210_v1 = vld [vmem:[%s205_s5] sm:$0xff]  ;;  %s269_s28 = sshll.u32 %s201_s19, 4  ;;  %s414_s5 = sshra.s32 %s272_s29, 4  ;;  %s270_s28 = int_to_ptr.vmem [resolvable:$true] %s269_s28  ;;  %s415_s5 = int_to_ptr.hbm [resolvable:$true] %s414_s5 }
  0x18   : > { %v247_v2 = vld [vmem:[%s209_s8] sm:$0xff]  ;;  %v212_v3 = vsel %vm211_vm0, %v210_v1, 0.0  ;;  %v216_v5 = vmul.f32 %v210_v1, %v210_v1  ;;  %s416_s6 = scalar_lea.hbm %s415_s5, 8  ;;  %p421_p0 = scmp.lt.s32.totalorder %s415_s5, %s591_s4 }
  0x19   : > { %vm248_vm1 = vcmp.ne.s32.totalorder %v247_v2, 0  ;;  %213 = vadd.xlane.f32.xlu0 %v212_v3  ;;  %p417_p11 = scmp.ne.s32.totalorder %s415_s5, %s416_s6  ;;  %p422_p1 = scmp.lt.s32.totalorder %s420_s10, %s416_s6 }
  0x1a   : > { %v249_v4 = vsel %vm248_vm1, 1, %v464_v0  ;;  %v217_v6 = vsel %vm211_vm0, %v216_v5, 0.0 }
  0x1b   : > { %251 = vperm.xlu1 %394, %v249_v4   ;;  %p418_p12 = pnand %p417_p11, %p528_p5  ;;  %p423_p2 = por %p422_p1, %p421_p0 }
  0x1d   : > { %p419_p13 = pneg %p418_p12 }
  0x1f   : > { %p424_p3 = pnand %p423_p2, %p419_p13 }
  0x21   : > { %218 = vadd.xlane.f32.xlu0 %v217_v6 }
  0x8c   : > { %v214_v7 = vpop.xlane.xlu0 %213 }
  0x8d   : > { %v215_v8 = vmul.f32 0.03125, %v214_v7  ;;  %v252_v25 = vpop.permute.xlu1 %251 }
  0x8e   : > { %vm253_vm5 = vcmp.eq.s32.totalorder %v252_v25, 1 }
  0x8f   : > { %v221_v10 = vmul.f32 %v215_v8, %v215_v8  ;;  %v235_v21 = vsub.f32 %v210_v1, %v215_v8 }
  0x94   : > { %v219_v9 = vpop.xlane.xlu0 %218 }
  0x95   : > { %v220_v11 = vmul.f32 0.03125, %v219_v9 }
  0x97   : > { %v222_v12 = vsub.f32 %v220_v11, %v221_v10 }
  0x99   : > { %v223_v13 = vmax.f32 %v222_v12, 0.0 }
  0x9b   : > { %v224_v14 = vadd.f32 1e-05, %v223_v13 }
  0x9d   : > { %398 = vrsqrt.f32 %v224_v14  ;;  %vm231_vm3 = vweird.f32 %v224_v14 }
  0xa3   : > { %v399_v15 = vpop.eup %398 }
  0xa4   : > { %v226_v16 = vmul.f32 %v399_v15, %v224_v14  ;;  %vm232_vm2 = vweird.f32 %v399_v15 }
  0xa5   : > { %vm233_vm4 = vmor %vm231_vm3, %vm232_vm2 }
  0xa6   : > { %v227_v17 = vmul.f32 %v399_v15, %v226_v16 }
  0xa8   : > { %v228_v18 = vmul.f32 0.5, %v227_v17 }
  0xaa   : > { %v229_v19 = vsub.f32 1.5, %v228_v18 }
  0xac   : > { %v230_v20 = vmul.f32 %v399_v15, %v229_v19 }
  0xae   : > { %v234_v23 = vsel %vm233_vm4, %v399_v15, %v230_v20 }
  0xaf   : > { %v236_v26 = vmul.f32 %v235_v21, %v234_v23 }
  0xb1   : > { %v241_v27 = vmul.f32 %v396_v22, %v236_v26 }
  0xb3   : > { %v246_v28 = vadd.f32 %v397_v24, %v241_v27 }
  0xb5   : > { %v254_v29 = vsel %vm253_vm5, %v246_v28, 0.0 }
  0xb6   : > { %255 = vst.msk [vmem:[%s201_s19] sm:$0xff] %vm211_vm0, %v254_v29 }
  0xb7   : > { %427 = shalt.err (!%p424_p3)
}
  0xb8   : > { %354 = dma.vmem_to_hbm [thread:$0]  (%p528_p5), %s270_s28, 128, %s272_s29, %s257_s30  }
  0xb9 PF: > { %p360_p4 = scmp.ge.s32.totalorder %s462_s18, 2  ;;  %s283_s9 = sand.u32 1, %s450_s15  }
  0xba   : > { %s284_s13 = scalar_lea.sflag [#allocation3], %s283_s9 }
  0xbb   : > { %p357_p7 = pnand %p360_p4, %p532_p6 }
  0xbd   : > { %p358_p8 = pneg %p357_p7 }
  0xbf   : > { %445 = dma.done.wait (%p358_p8), %s284_s13, 128  }
  0xc0   : > { %447 = vsyncadd (%p358_p8), %s284_s13, 4294967168  ;;  %p14_p9 = scmp.ge.s32.totalorder %s515_s21, 4   ;;  %s594_s15 = smov %s454_s16 }
  0xc1   : > { %s595_s16 = smov %s458_s17  ;;  %s596_s17 = smov %s526_s24 }
  0xc2   : > { %s597_s18 = smov %s515_s21  ;;  %16 = sbr.rel (!%p14_p9) target bundleno = 3 (0x3), region = 74 }
  0xc7   :  { %290 = vsyncpa [#allocation3], 1 }
  0xc8   :  { %292 = vsyncpa [#allocation3 + $0x1], 1 }

</bundles_post_ra>
